<compile_context>
chip_gen: v7x
topology: tpu7x:2x2x1
jax: 0.10.0
libtpu: 0.0.40
codegen_flags: <defaults>
</compile_context>

<pallas_src>
import math
import jax
import jax.numpy as jnp
from jax.experimental import pallas as pl
from jax.experimental.pallas import tpu as pltpu


def _interaction_kernel(vcat_ref, a_ref, w_ref, b_ref, a_out_ref, v_out_ref):
    w = a_ref.shape[0]

    # --- normalize(A): A = (A >= 0.5); D = diag(rowsum); A = D^{-1/2} A D^{-1/2} ---
    a_bin = (a_ref[...] >= 0.5).astype(jnp.float32)                    # (w, w)
    d_col = jnp.sum(a_bin, axis=1, keepdims=True)                      # (w, 1) row degrees
    # TODO(synk): torch's sqrt(D)/D is NaN off-diagonal (0/0) and for zero-degree rows; we
    # implement the evident intent diag(d^-1/2), with a zero-degree guard, so results are finite.
    dis_col = jnp.where(d_col > 0.0, jax.lax.rsqrt(d_col), 0.0)        # (w, 1) = d^-1/2 (EUP)
    # Lane-oriented copy of the row degrees: (ones @ A_bin^T)[i, j] = deg(j) for every i.
    # One tiny MXU op replaces the previous iota-diag build + cross-sublane reduce.
    ones_ww = jnp.ones((w, w), dtype=jnp.float32)
    d_row = jax.lax.dot_general(ones_ww, a_bin,
                                dimension_numbers=(((1,), (1,)), ((), ())),
                                preferred_element_type=jnp.float32)    # (w, w), rows identical
    dis_row = jnp.where(d_row > 0.0, jax.lax.rsqrt(d_row), 0.0)
    # Pure elementwise scaling == D^{-1/2} A D^{-1/2} (no diag-matrix matmuls).
    a_out_ref[...] = a_bin * dis_col * dis_row

    # --- V = 1x1 conv on cat(actor, lane): ONE fused (w, din) @ (din, dout) MXU matmul ---
    v = jnp.dot(vcat_ref[...], w_ref[...], preferred_element_type=jnp.float32)
    v_out_ref[...] = (v + b_ref[...]).astype(v_out_ref.dtype)
    # NOTE: the torch forward also computes `out = A @ V` and then discards it; skipped here.


def unlimited_interaction_layer(actor, lane, A_raw, conv_w, conv_b, *, compute_dtype=None):
    """actor: (na, din) or (B, na, din); lane: (nl, din) or (B, nl, din); A_raw: (w, w);
    conv_w: (dout, din, 1, 1) torch-style; conv_b: (dout,).
    Returns (A_norm (w, w), V) with V shaped (w, dout) (unbatched) or (B, w, dout) (batched).
    compute_dtype: optionally jnp.bfloat16 to run the conv matmul with bf16 operands
    (f32 accumulation) -- recommended on v5e."""
    batched = actor.ndim == 3
    if not batched:
        actor = actor[None]
        lane = lane[None]
    B, na, din = actor.shape
    nl = lane.shape[1]
    w_size = A_raw.shape[0]
    assert na + nl == w_size, "cat(actor, lane) must produce w_size rows"
    dout = conv_w.shape[0]

    # Fuse the two row-block matmuls: concatenate once here (cheap) so the kernel does a single
    # (w_size, din) @ (din, dout) matmul with one contiguous lane-dense store.
    vcat = jnp.concatenate([actor, lane], axis=1)                      # (B, w_size, din)
    conv_w_t = conv_w.reshape(dout, din).T                             # (din, dout)
    conv_b2 = conv_b.reshape(1, dout)

    if compute_dtype is not None:
        # bf16 operands, f32 accumulation inside the kernel (halves operand DMA bytes).
        vcat = vcat.astype(compute_dtype)
        conv_w_t = conv_w_t.astype(compute_dtype)

    out_shape = (
        jax.ShapeDtypeStruct((B, w_size, w_size), jnp.float32),        # A_norm (per batch step)
        jax.ShapeDtypeStruct((B, w_size, dout), jnp.float32),          # V
    )

    a_norm, v = pl.pallas_call(
        _interaction_kernel,
        out_shape=out_shape,
        grid=(B,),
        in_specs=[
            pl.BlockSpec((None, w_size, din), lambda b: (b, 0, 0)),    # cat(actor, lane)
            pl.BlockSpec((w_size, w_size), lambda b: (0, 0)),          # A (shared)
            pl.BlockSpec((din, dout), lambda b: (0, 0)),               # conv weight (shared)
            pl.BlockSpec((1, dout), lambda b: (0, 0)),                 # conv bias (shared)
        ],
        out_specs=(
            pl.BlockSpec((None, w_size, w_size), lambda b: (b, 0, 0)),
            pl.BlockSpec((None, w_size, dout), lambda b: (b, 0, 0)),
        ),
        # "parallel" batch axis: shards across both v7x TensorCores; harmless at B=1.
        compiler_params=pltpu.CompilerParams(dimension_semantics=("parallel",)),
    )(vcat, A_raw, conv_w_t, conv_b2)

    # A is a shared module buffer: every batch step writes the identical matrix; return one copy.
    a_norm0 = a_norm[0]
    if not batched:
        return a_norm0, v[0]
    return a_norm0, v


if __name__ == "__main__":
    # Small, TPU-friendly sizes (node counts multiples of 8, feature dim = 128).
    actor_size, t_size, lane_size = 40, 8, 16
    dim_in = dim_out = 128
    w_size = actor_size + t_size + lane_size            # 64
    na, nl = actor_size + t_size, lane_size             # 48, 16
    B = 4

    key = jax.random.PRNGKey(0)
    k_a, k_l, k_A, k_w, k_b = jax.random.split(key, 5)

    # batched inputs (the unbatched/module-parity call uses slice 0)
    actor_b = jax.random.normal(k_a, (B, na, dim_in), dtype=jnp.float32)
    lane_b = jax.random.normal(k_l, (B, nl, dim_in), dtype=jnp.float32)

    # parameters (deterministic synthetic init; self.weight/self.bias/self.w unused in forward)
    A_raw = jax.random.normal(k_A, (w_size, w_size), dtype=jnp.float32)
    stdv = 1.0 / math.sqrt(dim_in)
    conv_w = jax.random.uniform(k_w, (dim_out, dim_in, 1, 1), jnp.float32, -stdv, stdv)
    conv_b = jax.random.uniform(k_b, (dim_out,), jnp.float32, -stdv, stdv)

    # 1) module-parity unbatched call
    a1, v1 = unlimited_interaction_layer(actor_b[0], lane_b[0], A_raw, conv_w, conv_b)
    # 2) batched call: amortizes launch overhead, parallel grid over B
    aB, vB = unlimited_interaction_layer(actor_b, lane_b, A_raw, conv_w, conv_b)
    jax.block_until_ready((a1, v1, aB, vB))

    # pure-JAX reference (same zero-degree guard as the kernel)
    a_bin = (A_raw >= 0.5).astype(jnp.float32)
    d = a_bin.sum(axis=1)
    dis = jnp.where(d > 0, 1.0 / jnp.sqrt(d), 0.0)
    a_ref = a_bin * dis[:, None] * dis[None, :]
    w2d = conv_w.reshape(dim_out, dim_in)
    v_ref_b = jnp.concatenate([actor_b, lane_b], axis=1) @ w2d.T + conv_b

    assert jnp.allclose(a1, a_ref, atol=1e-5, rtol=1e-5)
    assert jnp.allclose(aB, a_ref, atol=1e-5, rtol=1e-5)
    assert jnp.allclose(v1, v_ref_b[0], atol=1e-4, rtol=1e-4)
    assert jnp.allclose(vB, v_ref_b, atol=1e-4, rtol=1e-4)
    print("KERNEL_OK")
</pallas_src>

<mosaic_0001>
module attributes {stable_mosaic.version = 11 : i64} {
  func.func @_interaction_kernel(%arg0: i32, %arg1: memref<1x64x128xf32, #tpu.memory_space<vmem>>, %arg2: memref<64x64xf32, #tpu.memory_space<vmem>>, %arg3: memref<128x128xf32, #tpu.memory_space<vmem>>, %arg4: memref<1x128xf32, #tpu.memory_space<vmem>>, %arg5: memref<1x64x64xf32, #tpu.memory_space<vmem>>, %arg6: memref<1x64x128xf32, #tpu.memory_space<vmem>>) attributes {dimension_semantics = [#tpu.dimension_semantics<parallel>], iteration_bounds = array<i64: 1>, scalar_prefetch = 0 : i64, scratch_operands = 0 : i64, tpu.core_type = #tpu.core_type<tc>, window_params = [{transform_indices = @transform_0, window_bounds = array<i64: 1, 64, 128>}, {pipeline_mode = #tpu.pipeline_mode<synchronous>, transform_indices = @transform_1, window_bounds = array<i64: 64, 64>}, {pipeline_mode = #tpu.pipeline_mode<synchronous>, transform_indices = @transform_2, window_bounds = array<i64: 128, 128>}, {pipeline_mode = #tpu.pipeline_mode<synchronous>, transform_indices = @transform_3, window_bounds = array<i64: 1, 128>}, {transform_indices = @transform_4, window_bounds = array<i64: 1, 64, 64>}, {transform_indices = @transform_5, window_bounds = array<i64: 1, 64, 128>}]} {
    %c0 = arith.constant 0 : index
    %c0_0 = arith.constant 0 : index
    %0 = vector.load %arg2[%c0, %c0_0] : memref<64x64xf32, #tpu.memory_space<vmem>>, vector<64x64xf32>
    %cst = arith.constant 5.000000e-01 : f32
    %1 = vector.broadcast %cst : f32 to vector<64x64xf32>
    %2 = arith.cmpf oge, %0, %1 : vector<64x64xf32>
    %3 = arith.extui %2 : vector<64x64xi1> to vector<64x64xi32>
    %4 = arith.sitofp %3 : vector<64x64xi32> to vector<64x64xf32>
    %cst_1 = arith.constant dense<0.000000e+00> : vector<64xf32>
    %5 = vector.multi_reduction <add>, %4, %cst_1 [1] : vector<64x64xf32> to vector<64xf32>
    %6 = vector.shape_cast %5 : vector<64xf32> to vector<64x1xf32>
    %cst_2 = arith.constant 0.000000e+00 : f32
    %7 = vector.broadcast %cst_2 : f32 to vector<64x1xf32>
    %8 = arith.cmpf ogt, %6, %7 : vector<64x1xf32>
    %9 = math.rsqrt %6 : vector<64x1xf32>
    %cst_3 = arith.constant 0.000000e+00 : f32
    %10 = vector.broadcast %cst_3 : f32 to vector<64x1xf32>
    %11 = arith.select %8, %9, %10 : vector<64x1xi1>, vector<64x1xf32>
    %cst_4 = arith.constant 1.000000e+00 : f32
    %12 = vector.broadcast %cst_4 : f32 to vector<64x64xf32>
    %cst_5 = arith.constant dense<0.000000e+00> : vector<64x64xf32>
    %13 = tpu.matmul %12, %4, %cst_5 {dimension_numbers = #tpu.dot_dimension_numbers<[1], [1], [0], [0], [0, 0, 1, 0], [], []>} : vector<64x64xf32>, vector<64x64xf32>, vector<64x64xf32> -> vector<64x64xf32>
    %cst_6 = arith.constant 0.000000e+00 : f32
    %14 = vector.broadcast %cst_6 : f32 to vector<64x64xf32>
    %15 = arith.cmpf ogt, %13, %14 : vector<64x64xf32>
    %16 = math.rsqrt %13 : vector<64x64xf32>
    %cst_7 = arith.constant 0.000000e+00 : f32
    %17 = vector.broadcast %cst_7 : f32 to vector<64x64xf32>
    %18 = arith.select %15, %16, %17 : vector<64x64xi1>, vector<64x64xf32>
    %19 = vector.broadcast %11 : vector<64x1xf32> to vector<64x64xf32>
    %20 = arith.mulf %4, %19 : vector<64x64xf32>
    %21 = arith.mulf %20, %18 : vector<64x64xf32>
    %c0_8 = arith.constant 0 : index
    %c0_9 = arith.constant 0 : index
    %c0_10 = arith.constant 0 : index
    %22 = vector.load %arg5[%c0_8, %c0_9, %c0_10] : memref<1x64x64xf32, #tpu.memory_space<vmem>>, vector<1x64x64xf32>
    %23 = vector.shape_cast %22 : vector<1x64x64xf32> to vector<64x64xf32>
    %24 = vector.shape_cast %21 : vector<64x64xf32> to vector<1x64x64xf32>
    tpu.vector_store %arg5[%c0_8, %c0_9, %c0_10], %24 {strides = array<i32>} : memref<1x64x64xf32, #tpu.memory_space<vmem>>, vector<1x64x64xf32>,
    %c0_11 = arith.constant 0 : index
    %c0_12 = arith.constant 0 : index
    %c0_13 = arith.constant 0 : index
    %25 = vector.load %arg1[%c0_11, %c0_12, %c0_13] : memref<1x64x128xf32, #tpu.memory_space<vmem>>, vector<1x64x128xf32>
    %26 = vector.shape_cast %25 : vector<1x64x128xf32> to vector<64x128xf32>
    %c0_14 = arith.constant 0 : index
    %c0_15 = arith.constant 0 : index
    %27 = vector.load %arg3[%c0_14, %c0_15] : memref<128x128xf32, #tpu.memory_space<vmem>>, vector<128x128xf32>
    %cst_16 = arith.constant dense<0.000000e+00> : vector<64x128xf32>
    %28 = tpu.matmul %26, %27, %cst_16 {dimension_numbers = #tpu.dot_dimension_numbers<[1], [0], [0], [1], [0, 0, 1, 1], [], []>} : vector<64x128xf32>, vector<128x128xf32>, vector<64x128xf32> -> vector<64x128xf32>
    %c0_17 = arith.constant 0 : index
    %c0_18 = arith.constant 0 : index
    %29 = vector.load %arg4[%c0_17, %c0_18] : memref<1x128xf32, #tpu.memory_space<vmem>>, vector<1x128xf32>
    %30 = vector.broadcast %29 : vector<1x128xf32> to vector<64x128xf32>
    %31 = arith.addf %28, %30 : vector<64x128xf32>
    %c0_19 = arith.constant 0 : index
    %c0_20 = arith.constant 0 : index
    %c0_21 = arith.constant 0 : index
    %32 = vector.load %arg6[%c0_19, %c0_20, %c0_21] : memref<1x64x128xf32, #tpu.memory_space<vmem>>, vector<1x64x128xf32>
    %33 = vector.shape_cast %32 : vector<1x64x128xf32> to vector<64x128xf32>
    %34 = vector.shape_cast %31 : vector<64x128xf32> to vector<1x64x128xf32>
    tpu.vector_store %arg6[%c0_19, %c0_20, %c0_21], %34 {strides = array<i32>} : memref<1x64x128xf32, #tpu.memory_space<vmem>>, vector<1x64x128xf32>,
    return
  }
  func.func @transform_0(%arg0: i32) -> (i32, i32, i32) {
    %c0_i32 = arith.constant 0 : i32
    %c0_i32_0 = arith.constant 0 : i32
    %c0_i32_1 = arith.constant 0 : i32
    return %arg0, %c0_i32, %c0_i32_0 : i32, i32, i32
  }
  func.func @transform_1(%arg0: i32) -> (i32, i32) {
    %c0_i32 = arith.constant 0 : i32
    %c0_i32_0 = arith.constant 0 : i32
    %c0_i32_1 = arith.constant 0 : i32
    return %c0_i32, %c0_i32_0 : i32, i32
  }
  func.func @transform_2(%arg0: i32) -> (i32, i32) {
    %c0_i32 = arith.constant 0 : i32
    %c0_i32_0 = arith.constant 0 : i32
    %c0_i32_1 = arith.constant 0 : i32
    return %c0_i32, %c0_i32_0 : i32, i32
  }
  func.func @transform_3(%arg0: i32) -> (i32, i32) {
    %c0_i32 = arith.constant 0 : i32
    %c0_i32_0 = arith.constant 0 : i32
    %c0_i32_1 = arith.constant 0 : i32
    return %c0_i32, %c0_i32_0 : i32, i32
  }
  func.func @transform_4(%arg0: i32) -> (i32, i32, i32) {
    %c0_i32 = arith.constant 0 : i32
    %c0_i32_0 = arith.constant 0 : i32
    %c0_i32_1 = arith.constant 0 : i32
    return %arg0, %c0_i32, %c0_i32_0 : i32, i32, i32
  }
  func.func @transform_5(%arg0: i32) -> (i32, i32, i32) {
    %c0_i32 = arith.constant 0 : i32
    %c0_i32_0 = arith.constant 0 : i32
    %c0_i32_1 = arith.constant 0 : i32
    return %arg0, %c0_i32, %c0_i32_0 : i32, i32, i32
  }
}

</mosaic_0001>

<bundles_post_ra>
// kernel: tpu_custom_call.1
= control target key start
LH: loop header
LB: loop body
LE: loop exit
PB: predicated region body
PF: predicated region fallthrough
CT: control target
= control target key end

     0   :  { %11 = vsyncpa [#allocation3], 0  ;;  %s1143_s0 = inlined_call_operand.hbm [shape: f32[1,64,128], index: 0, kind: input, shape index: {}]   ;;  %s1144_s1 = inlined_call_operand.hbm [shape: f32[64,64], index: 1, kind: input, shape index: {}]   ;;  %s1145_s2 = inlined_call_operand.hbm [shape: f32[128,128], index: 2, kind: input, shape index: {}]   ;;  %s1146_s3 = inlined_call_operand.vmem [shape: f32[1,128], index: 3, kind: input, shape index: {}]   ;;  %s1147_s4 = inlined_call_operand.hbm [shape: f32[1,64,64], index: 4, kind: output, shape index: {0}]   ;;  %s1148_s5 = inlined_call_operand.hbm [shape: f32[1,64,128], index: 5, kind: output, shape index: {1}]  }
   0x1   :  { %12 = vsyncpa [#allocation6], 0 }
   0x2   :  { %13 = vsyncpa [#allocation4], 0 }
   0x3   :  { %14 = vsyncpa [#allocation10], 0  ;;  %s853_s18 = smov [#allocation5]   ;;  %s854_s20 = smov [#allocation2]  }
   0x4   :  { %s32_s19 = sshll.u32 %s853_s18, 4  ;;  %s20_s21 = sshll.u32 %s854_s20, 4  ;;  %s33_s19 = int_to_ptr.vmem [resolvable:$true] %s32_s19  ;;  %s892_s21 = int_to_ptr.vmem [resolvable:$true] %s20_s21 }
   0x5   :  { %s735_s24 = scalar_lea.hbm %s1144_s1, 1024 }
   0x6   :  { %p736_p0 = scmp.ne.s32.totalorder %s1144_s1, %s735_s24  ;;  %p739_p1 = scmp.lt.u32.totalorder %s735_s24, %s1144_s1 }
   0x8   :  { %p741_p2 = pnand %p739_p1, %p736_p0 }
   0xa   :  { %744 = shalt.err (!%p741_p2)
}
   0xb   :  { %s745_s29 = scalar_lea.vmem %s33_s19, 1024  ;;  %p750_p4 = scmp.lt.s32.totalorder %s33_s19, %s33_s19 }
   0xc   :  { %p746_p3 = scmp.ne.s32.totalorder %s33_s19, %s745_s29  ;;  %p751_p5 = scmp.lt.s32.totalorder %s745_s29, %s745_s29 }
   0xe   :  { %p752_p6 = por %p751_p5, %p750_p4 }
  0x10   :  { %p753_p7 = pnand %p752_p6, %p746_p3 }
  0x12   :  { %756 = shalt.err (!%p753_p7)
}
  0x13   :  { %s855_s30 = smov 128   ;;  %s856_s6 = smov 8  }
  0x14   :  { %38 = dma.hbm_to_vmem [thread:$0]  %s1144_s1, 1024, %s33_s19, [#allocation6], %s855_s30, %s855_s30, %s856_s6  }
  0x15   :  { %s757_s11 = scalar_lea.hbm %s1143_s0, 1024 }
  0x16   :  { %p758_p8 = scmp.ne.s32.totalorder %s1143_s0, %s757_s11  ;;  %p761_p9 = scmp.lt.u32.totalorder %s757_s11, %s1143_s0 }
  0x18   :  { %p763_p10 = pnand %p761_p9, %p758_p8 }
  0x1a   :  { %766 = shalt.err (!%p763_p10)
}
  0x1b   :  { %s767_s16 = scalar_lea.vmem %s892_s21, 1024  ;;  %p772_p12 = scmp.lt.s32.totalorder %s892_s21, %s892_s21 }
  0x1c   :  { %p768_p11 = scmp.ne.s32.totalorder %s892_s21, %s767_s16  ;;  %p773_p13 = scmp.lt.s32.totalorder %s767_s16, %s767_s16 }
  0x1e   :  { %p774_p0 = por %p773_p13, %p772_p12 }
  0x20   :  { %p775_p1 = pnand %p774_p0, %p768_p11 }
  0x22   :  { %778 = shalt.err (!%p775_p1)
}
  0x23   :  { %26 = dma.hbm_to_vmem [thread:$0]  %s1143_s0, 1024, %s892_s21, [#allocation3], %s855_s30, %s855_s30, %s856_s6  }
  0x24   :  { %s857_s18 = smov [#allocation7]   ;;  %s779_s23 = scalar_lea.hbm %s1145_s2, 2048 }
  0x25   :  { %s44_s19 = sshll.u32 %s857_s18, 4  ;;  %p780_p2 = scmp.ne.s32.totalorder %s1145_s2, %s779_s23  ;;  %s45_s19 = int_to_ptr.vmem [resolvable:$true] %s44_s19 }
  0x26   :  { %p783_p3 = scmp.lt.u32.totalorder %s779_s23, %s1145_s2 }
  0x28   :  { %p785_p4 = pnand %p783_p3, %p780_p2 }
  0x2a   :  { %788 = shalt.err (!%p785_p4)
}
  0x2b   :  { %s789_s28 = scalar_lea.vmem %s45_s19, 2048  ;;  %p794_p6 = scmp.lt.s32.totalorder %s45_s19, %s45_s19 }
  0x2c   :  { %p790_p5 = scmp.ne.s32.totalorder %s45_s19, %s789_s28  ;;  %p795_p7 = scmp.lt.s32.totalorder %s789_s28, %s789_s28 }
  0x2e   :  { %p796_p8 = por %p795_p7, %p794_p6 }
  0x30   :  { %p797_p9 = pnand %p796_p8, %p790_p5 }
  0x32   :  { %800 = shalt.err (!%p797_p9)
}
  0x33   :  { %50 = dma.hbm_to_vmem [thread:$0]  %s1145_s2, 2048, %s45_s19, [#allocation6], %s855_s30, %s855_s30, %s856_s6  }
  0x34   :  { %845 = dma.done.wait [#allocation3], 1024  }
  0x35   :  { %846 = vsyncadd [#allocation3], 4294966272 }
  0x36   :  { %847 = dma.done.wait [#allocation6], 3072  }
  0x37   :  { %848 = vsyncadd [#allocation6], 4294964224  ;;  %vm94_vm0 = vcmask 523264   ;;  %v858_v0 = vmov 1.0   ;;  %v62_v1 = vld [vmem:[#allocation5] sm:$0xff]  ;;  %v63_v2 = vld [vmem:[#allocation5 + $0x8] sm:$0xff] }
  0x38   :  { %582 = vmatprep.mubr.msk.f32.mxu0 %vm94_vm0, %v858_v0  ;;  %v64_v3 = vld [vmem:[#allocation5 + $0x10] sm:$0xff]  ;;  %vm70_vm1 = vcmp.ge.f32.partialorder %v62_v1, 0.5  ;;  %vm71_vm2 = vcmp.ge.f32.partialorder %v63_v2, 0.5  ;;  %v65_v4 = vld [vmem:[#allocation5 + $0x18] sm:$0xff]  ;;  %v331_v5 = vld [vmem:[#allocation7] sm:$0xff]  ;;  %v859_v7 = vmov 0.0  }
  0x39   :  { %vm72_vm3 = vcmp.ge.f32.partialorder %v64_v3, 0.5  ;;  %v332_v6 = vld [vmem:[#allocation7 + $0x8] sm:$0xff]  ;;  %v946_v8 = vsel %vm70_vm1, 1.0, %v859_v7  ;;  %v948_v9 = vsel %vm71_vm2, 1.0, %v859_v7  ;;  %vm952_vm4 = vmpackc.low %vm94_vm0, %vm94_vm0  ;;  %vm73_vm5 = vcmp.ge.f32.partialorder %v65_v4, 0.5  ;;  %v333_v12 = vld [vmem:[#allocation7 + $0x10] sm:$0xff] }
  0x3a   :  { %v956_v11 = vsel %vm72_vm3, 1.0, %v859_v7  ;;  %v334_v13 = vld [vmem:[#allocation7 + $0x18] sm:$0xff]  ;;  %v638_v14 = vpack.c.bf16 %v948_v9, %v946_v8  ;;  %v960_v15 = vsel %vm73_vm5, 1.0, %v859_v7  ;;  %v662_v16 = vpack.c.bf16 %v332_v6, %v331_v5  ;;  %v66_v18 = vld [vmem:[#allocation5 + $0x20] sm:$0xff]  ;;  %v67_v19 = vld [vmem:[#allocation5 + $0x28] sm:$0xff] }
  0x3b   :  { %v666_v17 = vpack.c.bf16 %v334_v13, %v333_v12  ;;  %v644_v20 = vpack.c.bf16 %v960_v15, %v956_v11  ;;  %v335_v21 = vld [vmem:[#allocation7 + $0x20] sm:$0xff]  ;;  %v336_v22 = vld [vmem:[#allocation7 + $0x28] sm:$0xff]  ;;  %vm74_vm6 = vcmp.ge.f32.partialorder %v66_v18, 0.5  ;;  %vm75_vm7 = vcmp.ge.f32.partialorder %v67_v19, 0.5  ;;  %v337_v28 = vld [vmem:[#allocation7 + $0x30] sm:$0xff] }
  0x3c   :  { %640 = vmatprep.subr.msk.bf16.mxu0 %vm952_vm4, %v638_v14  ;;  %663 = vmatprep.subr.bf16.mxu1 %v662_v16  ;;  %v101_v23 = vsel %vm94_vm0, %v956_v11, 0.0  ;;  %v95_v24 = vsel %vm94_vm0, %v946_v8, 0.0  ;;  %v670_v25 = vpack.c.bf16 %v336_v22, %v335_v21  ;;  %v974_v26 = vsel %vm74_vm6, 1.0, %v859_v7  ;;  %v338_v29 = vld [vmem:[#allocation7 + $0x38] sm:$0xff]  ;;  %v323_v30 = vld [vmem:[#allocation2] sm:$0xff]  ;;  %v68_v33 = vld [vmem:[#allocation5 + $0x30] sm:$0xff] }
  0x3d   :  { %643 = vmatpush3.bf16.xpose.msk.msra.mxu0 %vm952_vm4, %v638_v14  ;;  %665 = vmatpush3.bf16.msra.mxu1 %v662_v16  ;;  %v976_v27 = vsel %vm75_vm7, 1.0, %v859_v7  ;;  %v104_v31 = vsel %vm94_vm0, %v960_v15, 0.0  ;;  %v98_v32 = vsel %vm94_vm0, %v948_v9, 0.0  ;;  %v69_v34 = vld [vmem:[#allocation5 + $0x38] sm:$0xff]  ;;  %v674_v36 = vpack.c.bf16 %v338_v29, %v337_v28  ;;  %v339_v37 = vld [vmem:[#allocation7 + $0x40] sm:$0xff]  ;;  %v340_v38 = vld [vmem:[#allocation7 + $0x48] sm:$0xff] }
  0x3e   :  { %646 = vmatprep.subr.msk.bf16.mxu0 %vm952_vm4, %v644_v20  ;;  %667 = vmatprep.subr.bf16.mxu1 %v666_v17  ;;  %v650_v35 = vpack.c.bf16 %v976_v27, %v974_v26  ;;  %vm76_vm8 = vcmp.ge.f32.partialorder %v68_v33, 0.5  ;;  %vm77_vm9 = vcmp.ge.f32.partialorder %v69_v34, 0.5  ;;  %v110_v39 = vsel %vm94_vm0, %v976_v27, 0.0  ;;  %v341_v44 = vld [vmem:[#allocation7 + $0x50] sm:$0xff]  ;;  %v342_v45 = vld [vmem:[#allocation7 + $0x58] sm:$0xff]  ;;  %v343_v50 = vld [vmem:[#allocation7 + $0x60] sm:$0xff] }
  0x3f   :  { %102 = vadd.xlane.f32.xlu1 %v101_v23  ;;  %96 = vadd.xlane.f32.xlu0 %v95_v24  ;;  %v107_v40 = vsel %vm94_vm0, %v974_v26, 0.0  ;;  %v678_v41 = vpack.c.bf16 %v340_v38, %v339_v37  ;;  %v992_v42 = vsel %vm76_vm8, 1.0, %v859_v7  ;;  %v994_v43 = vsel %vm77_vm9, 1.0, %v859_v7  ;;  %v344_v51 = vld [vmem:[#allocation7 + $0x68] sm:$0xff]  ;;  %v345_v53 = vld [vmem:[#allocation7 + $0x70] sm:$0xff]  ;;  %v346_v54 = vld [vmem:[#allocation7 + $0x78] sm:$0xff] }
  0x40   :  { %626 = vmatprep.mubr.f32.mxu1 %v323_v30  ;;  %v116_v46 = vsel %vm94_vm0, %v994_v43, 0.0  ;;  %v113_v47 = vsel %vm94_vm0, %v992_v42, 0.0  ;;  %v656_v48 = vpack.c.bf16 %v994_v43, %v992_v42  ;;  %v682_v49 = vpack.c.bf16 %v342_v45, %v341_v44  ;;  %v324_v56 = vld [vmem:[#allocation2 + $0x8] sm:$0xff]  ;;  %v325_v57 = vld [vmem:[#allocation2 + $0x10] sm:$0xff]  ;;  %v326_v58 = vld [vmem:[#allocation2 + $0x18] sm:$0xff] }
  0x41   :  { %669 = vmatpush3.bf16.msra.mxu1 %v666_v17  ;;  %v686_v52 = vpack.c.bf16 %v344_v51, %v343_v50  ;;  %v690_v55 = vpack.c.bf16 %v346_v54, %v345_v53  ;;  %v327_v59 = vld [vmem:[#allocation2 + $0x20] sm:$0xff]  ;;  %v328_v60 = vld [vmem:[#allocation2 + $0x28] sm:$0xff]  ;;  %v329_v61 = vld [vmem:[#allocation2 + $0x30] sm:$0xff] }
  0x42   :  { %671 = vmatprep.subr.bf16.mxu1 %v670_v25  ;;  %v330_v62 = vld [vmem:[#allocation2 + $0x38] sm:$0xff]  ;;  %v1031_v6 = vld [vmem:[%s1146_s3] ss:$0 sm:$0xff]  ;;  %s860_s3 = smov [#allocation9]  }
  0x43   :  { %105 = vadd.xlane.f32.xlu1 %v104_v31  ;;  %99 = vadd.xlane.f32.xlu0 %v98_v32  ;;  %s484_s7 = sshll.u32 %s860_s3, 4  ;;  %s1079_s7 = int_to_ptr.vmem [resolvable:$true] %s484_s7 }
  0x44   :  { %s801_s8 = scalar_lea.vmem %s1079_s7, 1024  ;;  %p806_p11 = scmp.lt.s32.totalorder %s1079_s7, %s1079_s7 }
  0x45   :  { %649 = vmatpush3.bf16.xpose.msk.msra.mxu0 %vm952_vm4, %v644_v20  ;;  %673 = vmatpush3.bf16.msra.mxu1 %v670_v25  ;;  %p802_p10 = scmp.ne.s32.totalorder %s1079_s7, %s801_s8  ;;  %p807_p12 = scmp.lt.s32.totalorder %s801_s8, %s801_s8 }
  0x46   :  { %652 = vmatprep.subr.msk.bf16.mxu0 %vm952_vm4, %v650_v35  ;;  %675 = vmatprep.subr.bf16.mxu1 %v674_v36 }
  0x47   :  { %111 = vadd.xlane.f32.xlu1 %v110_v39  ;;  %108 = vadd.xlane.f32.xlu0 %v107_v40  ;;  %p808_p13 = por %p807_p12, %p806_p11 }
  0x49   :  { %677 = vmatpush3.bf16.msra.mxu1 %v674_v36  ;;  %p809_p0 = pnand %p808_p13, %p802_p10 }
  0x4a   :  { %679 = vmatprep.subr.bf16.mxu1 %v678_v41 }
  0x4b   :  { %117 = vadd.xlane.f32.xlu1 %v116_v46  ;;  %114 = vadd.xlane.f32.xlu0 %v113_v47 }
  0x4d   :  { %655 = vmatpush3.bf16.xpose.msk.msra.mxu0 %vm952_vm4, %v650_v35  ;;  %681 = vmatpush3.bf16.msra.mxu1 %v678_v41 }
  0x4e   :  { %658 = vmatprep.subr.msk.bf16.mxu0 %vm952_vm4, %v656_v48  ;;  %683 = vmatprep.subr.bf16.mxu1 %v682_v49 }
  0x51   :  { %685 = vmatpush3.bf16.msra.mxu1 %v682_v49 }
  0x52   :  { %687 = vmatprep.subr.bf16.mxu1 %v686_v52 }
  0x55   :  { %661 = vmatpush3.bf16.xpose.msk.msra.mxu0 %vm952_vm4, %v656_v48  ;;  %689 = vmatpush3.bf16.msra.mxu1 %v686_v52 }
  0x56   :  { %691 = vmatprep.subr.bf16.mxu1 %v690_v55 }
  0x59   :  { %693 = vmatpush3.bf16.msra.mxu1 %v690_v55 }
  0x5c   :  { %583 = vmatmul.mubr.msk.f32.vlgmr.msra.gmra.mrb[0].mxu0 %vm94_vm0, %v858_v0  ;;  %627 = vmatmul.mubr.f32.vlgmr.msra.gmra.mrb[0].mxu1 %v324_v56 }
  0x5d   :  { %585 = vmatprep.mubr.msk.f32.mxu0 %vm94_vm0, %v858_v0  ;;  %629 = vmatprep.mubr.f32.mxu1 %v325_v57 }
  0x60   :  { %586 = vmatmul.mubr.msk.f32.gmra.mrb[2].mxu0 %vm94_vm0, %v858_v0  ;;  %630 = vmatmul.mubr.f32.gmra.mrb[2].mxu1 %v326_v58 }
  0x61   :  { %588 = vmatprep.mubr.msk.f32.mxu0 %vm94_vm0, %v858_v0  ;;  %632 = vmatprep.mubr.f32.mxu1 %v327_v59 }
  0x64   :  { %589 = vmatmul.mubr.msk.f32.gmra.mrb[4].mxu0 %vm94_vm0, %v858_v0  ;;  %633 = vmatmul.mubr.f32.gmra.mrb[4].mxu1 %v328_v60 }
  0x65   :  { %591 = vmatprep.mubr.msk.f32.mxu0 %vm94_vm0, %v858_v0  ;;  %635 = vmatprep.mubr.f32.mxu1 %v329_v61 }
  0x68   :  { %592 = vmatmul.mubr.msk.f32.gmra.mrb[6].mxu0 %vm94_vm0, %v858_v0  ;;  %636 = vmatmul.mubr.f32.gmra.mrb[6].mxu1 %v330_v62 }
  0xcc   :  { %v1022_v63 = vpop.xlane.xlu1 %102  ;;  %v97_v1 = vpop.xlane.xlu0 %96 }
  0xcd   :  { %vm119_vm11 = vcmp.gt.f32.partialorder %v97_v1, 0.0  ;;  %vm121_vm13 = vcmp.gt.f32.partialorder %v1022_v63, 0.0 }
  0xd0   :  { %v106_v2 = vpop.xlane.xlu1 %105  ;;  %v100_v3 = vpop.xlane.xlu0 %99 }
  0xd1   :  { %703 = vrsqrt.f32 %v100_v3  ;;  %vm120_vm10 = vcmp.gt.f32.partialorder %v100_v3, 0.0  ;;  %vm122_vm12 = vcmp.gt.f32.partialorder %v106_v2, 0.0 }
  0xd2   :  { %705 = vrsqrt.f32 %v97_v1 }
  0xd3   :  { %707 = vrsqrt.f32 %v106_v2 }
  0xd4   :  { %v1024_v4 = vpop.xlane.xlu1 %111  ;;  %v1026_v5 = vpop.xlane.xlu0 %108  ;;  %709 = vrsqrt.f32 %v1022_v63 }
  0xd5   :  { %vm124_vm14 = vcmp.gt.f32.partialorder %v1024_v4, 0.0  ;;  %vm123_vm2 = vcmp.gt.f32.partialorder %v1026_v5, 0.0 }
  0xd8   :  { %v1037_v16 = vpop.xlane.xlu1 %117  ;;  %v1039_v17 = vpop.xlane.xlu0 %114 }
  0xd9   :  { %vm126_vm5 = vcmp.gt.f32.partialorder %v1037_v16, 0.0  ;;  %vm125_vm6 = vcmp.gt.f32.partialorder %v1039_v17, 0.0 }
  0xdb   :  { %v704_v20 = vpop.eup %703 }
  0xdc   :  { %v706_v24 = vpop.eup %705  ;;  %v136_v28 = vsel %vm120_vm10, %v704_v20, 0.0 }
  0xdd   :  { %v708_v31 = vpop.eup %707  ;;  %v135_v32 = vsel %vm119_vm11, %v706_v24, 0.0  ;;  %v300_v39 = vmul.f32 %v948_v9, %v136_v28 }
  0xde   :  { %v710_v36 = vpop.eup %709  ;;  %v299_v41 = vmul.f32 %v946_v8, %v135_v32  ;;  %v138_v44 = vsel %vm122_vm12, %v708_v31, 0.0 }
  0xdf   :  { %v137_v9 = vsel %vm121_vm13, %v710_v36, 0.0  ;;  %v302_v56 = vmul.f32 %v960_v15, %v138_v44 }
  0xe0   :  { %v301_v59 = vmul.f32 %v956_v11, %v137_v9 }
 0x12f   :  { %v584_v0 = vpop.f32.mrb[0].mxu0  ;;  %v628_v7 = vpop.f32.mrb[0].mxu1 }
 0x130   :  { %711 = vrsqrt.f32 %v584_v0  ;;  %v236_v10 = vpop.f32.mrb[1].mxu0  ;;  %v426_v12 = vadd.f32 %v628_v7, %v1031_v6  ;;  %v420_v13 = vpop.f32.mrb[1].mxu1  ;;  %vm276_vm15 = vcmp.gt.f32.partialorder %v584_v0, 0.0 }
 0x131   :  { %713 = vrsqrt.f32 %v236_v10  ;;  %v421_v14 = vadd.f32 %v1031_v6, %v420_v13  ;;  %vm275_vm1 = vcmp.gt.f32.partialorder %v236_v10, 0.0 }
 0x132   :  { %715 = vrsqrt.f32 %v1024_v4  ;;  %460 = vst [vmem:[#allocation9 + $0x8] sm:$0xff] %v426_v12 }
 0x133   :  { %717 = vrsqrt.f32 %v1026_v5  ;;  %v1042_v18 = vpop.f32.mrb[2].mxu0  ;;  %459 = vst [vmem:[#allocation9] sm:$0xff] %v421_v14  ;;  %v631_v19 = vpop.f32.mrb[2].mxu1 }
 0x134   :  { %719 = vrsqrt.f32 %v1042_v18  ;;  %v1045_v21 = vpop.f32.mrb[3].mxu0  ;;  %v436_v22 = vadd.f32 %v631_v19, %v1031_v6  ;;  %v430_v23 = vpop.f32.mrb[3].mxu1  ;;  %vm278_vm3 = vcmp.gt.f32.partialorder %v1042_v18, 0.0 }
 0x135   :  { %721 = vrsqrt.f32 %v1045_v21  ;;  %v431_v25 = vadd.f32 %v1031_v6, %v430_v23  ;;  %vm277_vm4 = vcmp.gt.f32.partialorder %v1045_v21, 0.0 }
 0x136   :  { %723 = vrsqrt.f32 %v1037_v16  ;;  %462 = vst [vmem:[#allocation9 + $0x18] sm:$0xff] %v436_v22 }
 0x137   :  { %725 = vrsqrt.f32 %v1039_v17  ;;  %v1052_v29 = vpop.f32.mrb[4].mxu0  ;;  %461 = vst [vmem:[#allocation9 + $0x10] sm:$0xff] %v431_v25  ;;  %v634_v30 = vpop.f32.mrb[4].mxu1 }
 0x138   :  { %727 = vrsqrt.f32 %v1052_v29  ;;  %v1055_v33 = vpop.f32.mrb[5].mxu0  ;;  %v446_v34 = vadd.f32 %v634_v30, %v1031_v6  ;;  %v440_v35 = vpop.f32.mrb[5].mxu1 }
 0x139   :  { %729 = vrsqrt.f32 %v1055_v33  ;;  %v441_v37 = vadd.f32 %v1031_v6, %v440_v35 }
 0x13a   :  { %v712_v38 = vpop.eup %711  ;;  %464 = vst [vmem:[#allocation9 + $0x28] sm:$0xff] %v446_v34 }
 0x13b   :  { %v714_v40 = vpop.eup %713  ;;  %v292_v45 = vsel %vm276_vm15, %v712_v38, 0.0  ;;  %v1065_v46 = vpop.f32.mrb[6].mxu0  ;;  %463 = vst [vmem:[#allocation9 + $0x20] sm:$0xff] %v441_v37 }
 0x13c   :  { %v637_v47 = vpop.f32.mrb[6].mxu1  ;;  %v716_v48 = vpop.eup %715  ;;  %v308_v49 = vmul.f32 %v300_v39, %v292_v45  ;;  %v291_v50 = vsel %vm275_vm1, %v714_v40, 0.0  ;;  %731 = vrsqrt.f32 %v1065_v46 }
 0x13d   :  { %v1070_v51 = vpop.f32.mrb[7].mxu0  ;;  %v450_v8 = vpop.f32.mrb[7].mxu1  ;;  %v307_v53 = vmul.f32 %v299_v41, %v291_v50  ;;  %v456_v54 = vadd.f32 %v637_v47, %v1031_v6  ;;  %v140_v60 = vsel %vm124_vm14, %v716_v48, 0.0 }
 0x13e   :  { %v718_v52 = vpop.eup %717  ;;  %733 = vrsqrt.f32 %v1070_v51  ;;  %316 = vst.msk [vmem:[#allocation8 + $0x8] sm:$0xff] %vm94_vm0, %v308_v49  ;;  %v451_v57 = vadd.f32 %v1031_v6, %v450_v8 }
 0x13f   :  { %v720_v55 = vpop.eup %719  ;;  %315 = vst.msk [vmem:[#allocation8] sm:$0xff] %vm94_vm0, %v307_v53  ;;  %466 = vst [vmem:[#allocation9 + $0x38] sm:$0xff] %v456_v54  ;;  %v139_v62 = vsel %vm123_vm2, %v718_v52, 0.0 }
 0x140   :  { %v722_v58 = vpop.eup %721  ;;  %v294_v15 = vsel %vm278_vm3, %v720_v55, 0.0  ;;  %465 = vst [vmem:[#allocation9 + $0x30] sm:$0xff] %v451_v57 }
 0x141   :  { %v724_v61 = vpop.eup %723  ;;  %v310_v63 = vmul.f32 %v302_v56, %v294_v15  ;;  %v293_v1 = vsel %vm277_vm4, %v722_v58, 0.0 }
 0x142   :  { %v726_v11 = vpop.eup %725  ;;  %v309_v2 = vmul.f32 %v301_v59, %v293_v1 }
 0x143   :  { %812 = shalt.err (!%p809_p0)
}
 0x144   :  { %s813_s11 = scalar_lea.hbm %s1148_s5, 1024 }
 0x145   :  { %p814_p1 = scmp.ne.s32.totalorder %s1148_s5, %s813_s11  ;;  %p817_p2 = scmp.lt.u32.totalorder %s813_s11, %s1148_s5 }
 0x147   :  { %p819_p3 = pnand %p817_p2, %p814_p1 }
 0x149   :  { %822 = shalt.err (!%p819_p3)
}
 0x14a   :  { %490 = dma.vmem_to_hbm [thread:$0]  %s1079_s7, 1024, %s1148_s5, [#allocation10], %s855_s30, %s855_s30, %s856_s6   ;;  %v728_v3 = vpop.eup %727  ;;  %v304_v4 = vmul.f32 %v976_v27, %v140_v60  ;;  %318 = vst.msk [vmem:[#allocation8 + $0x18] sm:$0xff] %vm94_vm0, %v310_v63  ;;  %vm280_vm7 = vcmp.gt.f32.partialorder %v1052_v29, 0.0  ;;  %v303_v6 = vmul.f32 %v974_v26, %v139_v62  ;;  %v142_v0 = vsel %vm126_vm5, %v724_v61, 0.0  ;;  %317 = vst.msk [vmem:[#allocation8 + $0x10] sm:$0xff] %vm94_vm0, %v309_v2 }
 0x14b   :  { %v730_v5 = vpop.eup %729  ;;  %v296_v7 = vsel %vm280_vm7, %v728_v3, 0.0  ;;  %vm279_vm8 = vcmp.gt.f32.partialorder %v1055_v33, 0.0  ;;  %v141_v10 = vsel %vm125_vm6, %v726_v11, 0.0  ;;  %v306_v18 = vmul.f32 %v994_v43, %v142_v0  ;;  %s861_s5 = smov [#allocation8]  }
 0x14c   :  { %v312_v12 = vmul.f32 %v304_v4, %v296_v7  ;;  %v295_v27 = vsel %vm279_vm8, %v730_v5, 0.0  ;;  %v732_v14 = vpop.eup %731  ;;  %vm282_vm9 = vcmp.gt.f32.partialorder %v1065_v46, 0.0  ;;  %s472_s17 = sshll.u32 %s861_s5, 4  ;;  %v305_v16 = vmul.f32 %v992_v42, %v141_v10  ;;  %s473_s17 = int_to_ptr.vmem [resolvable:$true] %s472_s17 }
 0x14d   :  { %v311_v13 = vmul.f32 %v303_v6, %v295_v27  ;;  %v734_v26 = vpop.eup %733  ;;  %v298_v19 = vsel %vm282_vm9, %v732_v14, 0.0  ;;  %vm281_vm10 = vcmp.gt.f32.partialorder %v1070_v51, 0.0  ;;  %s823_s18 = scalar_lea.vmem %s473_s17, 1024  ;;  %p828_p5 = scmp.lt.s32.totalorder %s473_s17, %s473_s17 }
 0x14e   :  { %320 = vst.msk [vmem:[#allocation8 + $0x28] sm:$0xff] %vm94_vm0, %v312_v12  ;;  %v314_v17 = vmul.f32 %v306_v18, %v298_v19  ;;  %v297_v20 = vsel %vm281_vm10, %v734_v26, 0.0  ;;  %p824_p4 = scmp.ne.s32.totalorder %s473_s17, %s823_s18  ;;  %p829_p6 = scmp.lt.s32.totalorder %s823_s18, %s823_s18 }
 0x14f   :  { %319 = vst.msk [vmem:[#allocation8 + $0x20] sm:$0xff] %vm94_vm0, %v311_v13  ;;  %v313_v21 = vmul.f32 %v305_v16, %v297_v20 }
 0x150   :  { %322 = vst.msk [vmem:[#allocation8 + $0x38] sm:$0xff] %vm94_vm0, %v314_v17  ;;  %p830_p7 = por %p829_p6, %p828_p5 }
 0x151   :  { %321 = vst.msk [vmem:[#allocation8 + $0x30] sm:$0xff] %vm94_vm0, %v313_v21 }
 0x152   :  { %p831_p8 = pnand %p830_p7, %p824_p4 }
 0x154   :  { %834 = shalt.err (!%p831_p8)
}
 0x155   :  { %s835_s22 = scalar_lea.hbm %s1147_s4, 1024 }
 0x156   :  { %p836_p9 = scmp.ne.s32.totalorder %s1147_s4, %s835_s22  ;;  %p839_p10 = scmp.lt.u32.totalorder %s835_s22, %s1147_s4 }
 0x158   :  { %p841_p11 = pnand %p839_p10, %p836_p9 }
 0x15a   :  { %844 = shalt.err (!%p841_p11)
}
 0x15b   :  { %478 = dma.vmem_to_hbm [thread:$0]  %s473_s17, 1024, %s1147_s4, [#allocation4], %s855_s30, %s855_s30, %s856_s6  }
 0x15c   :  { %849 = dma.done.wait [#allocation4], 1024  }
 0x15d   :  { %850 = vsyncadd [#allocation4], 4294966272 }
 0x15e   :  { %851 = dma.done.wait [#allocation10], 1024  }
 0x15f   :  { %852 = vsyncadd [#allocation10], 4294966272 }
 0x160   :  { %497 = vsyncpa [#allocation3], 1 }
 0x161   :  { %498 = vsyncpa [#allocation6], 1 }
 0x162   :  { %499 = vsyncpa [#allocation4], 1 }
 0x163   :  { %500 = vsyncpa [#allocation10], 1 }

</bundles_post_ra>
